<compile_context>
chip_gen: v6e
topology: v6e:2x2x1
jax: 0.10.0
libtpu: 0.0.40
codegen_flags: <defaults>
</compile_context>

<pallas_src>
import jax
import jax.numpy as jnp
from jax import lax
from jax.experimental import pallas as pl
from jax.experimental.pallas import tpu as pltpu

LANES = 128


def _cdiv(a, b):
    return -(-a // b)


def _round_up(x, m):
    return _cdiv(x, m) * m


def _chip_config():
    """(split, leading-axis semantics, max block rows) for the current chip."""
    kind = ""
    try:
        kind = jax.devices()[0].device_kind.lower()
    except Exception:
        pass
    if "7" in kind:
        # v7x: 2 TensorCores/chip -> CORE_PARALLEL reliably shards the leading
        # axis across both cores; 2048-row (1 MiB) tiles amortize the
        # ~0.35us/step overhead at ~3.2 TB/s. VMEM stays well under 32 MiB.
        return 2, getattr(pltpu, "CORE_PARALLEL", "parallel"), 2048
    if "v4" in kind or "v5p" in kind:
        # megacore chips: a "parallel" leading axis is sharded across 2 TCs.
        return 2, "parallel", 1024
    # v5e / v6e / unknown: single TensorCore. 1024-row tiles already sit near
    # the HBM roofline and keep the masked path comfortably inside v5e's
    # 16 MiB default VMEM scope; SPLIT=1 avoids extra padding / writeback.
    return 1, "parallel", 1024


def _tiling(rows, split, max_block_rows, row_align):
    """Pick (split, block_rows, num_inner) so every grid block starts in-bounds.

    Partial (boundary) tail blocks are fine -- they are masked in-kernel --
    but a block whose start row is past the array would be fully out of
    bounds, so fall back to split=1 when the array is too small to split.
    """
    while True:
        nblocks = max(1, _cdiv(rows, split * max_block_rows))
        block_rows = _round_up(_cdiv(rows, split * nblocks), row_align)
        block_rows = min(block_rows, _round_up(max_block_rows, row_align))
        num_inner = _cdiv(rows, split * block_rows)
        if split == 1 or (split * num_inner - 1) * block_rows < rows:
            return split, block_rows, num_inner
        split = 1


def _valid_and_diff(pred_ref, target_ref, mask_ref):
    t = target_ref[...].astype(jnp.float32)
    p = pred_ref[...].astype(jnp.float32)
    valid = t > 0.0
    if mask_ref is not None:
        valid = valid & (mask_ref[...].astype(jnp.float32) > 0.0)
    diff = jnp.abs(t - p)
    return valid, diff


def _tail_mask(valid, rows_total, block_rows, num_inner):
    """AND the validity with an in-bounds row check for ragged tail blocks."""
    c = pl.program_id(0)
    i = pl.program_id(1)
    row0 = (c * num_inner + i) * block_rows
    rid = lax.broadcasted_iota(jnp.int32, (block_rows, LANES), 0) + row0
    return valid & (rid < rows_total)


def _make_pass1_kernel(has_mask, rows_total, block_rows, num_inner, needs_tail_mask):
    """Per-lane partial max of masked |diff| and exact int32 valid count."""

    def kernel(*refs):
        if has_mask:
            pred_ref, target_ref, mask_ref, max_ref, cnt_ref = refs
        else:
            pred_ref, target_ref, max_ref, cnt_ref = refs
            mask_ref = None

        i = pl.program_id(1)
        valid, diff = _valid_and_diff(pred_ref, target_ref, mask_ref)
        if needs_tail_mask:
            valid = _tail_mask(valid, rows_total, block_rows, num_inner)

        masked = jnp.where(valid, diff, 0.0)  # diff >= 0, so 0 is a safe identity
        # collapse the tile to a single (8,128) vreg; hidden under the HBM DMA
        nsub = block_rows // 8
        tile_max = jnp.max(masked.reshape(nsub, 8, LANES), axis=0)
        tile_cnt = jnp.sum(valid.astype(jnp.int32).reshape(nsub, 8, LANES), axis=0)

        @pl.when(i == 0)
        def _():
            max_ref[...] = tile_max
            cnt_ref[...] = tile_cnt

        @pl.when(i > 0)
        def _():
            max_ref[...] = jnp.maximum(max_ref[...], tile_max)
            cnt_ref[...] = cnt_ref[...] + tile_cnt

    return kernel


def _make_pass2_kernel(has_mask, rows_total, block_rows, num_inner, needs_tail_mask):
    """Per-lane partial sum of berhu(diff; delta); delta is an SMEM scalar."""

    def kernel(*refs):
        if has_mask:
            delta_ref, pred_ref, target_ref, mask_ref, sum_ref = refs
        else:
            delta_ref, pred_ref, target_ref, sum_ref = refs
            mask_ref = None

        i = pl.program_id(1)
        delta = delta_ref[0, 0]
        # scalar prep hoisted off the vector path
        thr = 2.0 * delta * delta
        inv2d = 1.0 / (2.0 * delta)

        valid, diff = _valid_and_diff(pred_ref, target_ref, mask_ref)
        if needs_tail_mask:
            valid = _tail_mask(valid, rows_total, block_rows, num_inner)

        # part1 = -F.threshold(-diff, -delta, 0)  ->  diff where diff < delta else 0
        part1 = jnp.where(diff < delta, diff, 0.0)
        # part2 = F.threshold(diff^2 + delta^2, 2*delta^2, 0) / (2*delta)
        sq = diff * diff + delta * delta
        part2 = jnp.where(sq > thr, sq, 0.0) * inv2d
        b = jnp.where(valid, part1 + part2, 0.0)

        nsub = block_rows // 8
        tile_sum = jnp.sum(b.reshape(nsub, 8, LANES), axis=0)

        @pl.when(i == 0)
        def _():
            sum_ref[...] = tile_sum

        @pl.when(i > 0)
        def _():
            sum_ref[...] = sum_ref[...] + tile_sum

    return kernel


def _prep(x, rows):
    """Flatten and view as (rows, 128) in the native dtype (no padded copy
    unless numel is not a multiple of 128)."""
    flat = jnp.ravel(x)
    pad = rows * LANES - flat.size
    if pad:
        # TODO(synk): only hit when numel % 128 != 0; a 1-D BlockSpec with
        # lane-level tail masking would avoid this padded copy entirely.
        flat = jnp.pad(flat, (0, pad))
    return flat.reshape(rows, LANES)


def berhu_loss(pred, target, mask=None, threshold=0.2):
    assert pred.ndim == target.ndim, "inconsistent dimensions"
    assert pred.shape == target.shape

    if mask is not None and mask.dtype == jnp.bool_:
        mask = mask.astype(jnp.float32)

    n = pred.size
    rows = _cdiv(n, LANES)

    operands_nd = [pred, target] + ([mask] if mask is not None else [])
    # sublane alignment for the narrowest streamed dtype (f32->8, bf16->16, i8->32)
    row_align = max(max(32 // jnp.dtype(o.dtype).itemsize for o in operands_nd), 8)

    split, lead_sem, max_block_rows = _chip_config()
    split, block_rows, num_inner = _tiling(rows, split, max_block_rows, row_align)
    needs_tail_mask = split * num_inner * block_rows != rows
    if split == 1:
        lead_sem = "arbitrary"  # size-1 axis; keep semantics trivially safe

    # zero lane-padding (rare) makes those slots invalid (target > 0 fails),
    # so they contribute nothing to the max, the count, or the sum.
    operands = [_prep(o, rows) for o in operands_nd]
    has_mask = mask is not None
    n_in = len(operands)

    grid = (split, num_inner)
    tile_spec = pl.BlockSpec((block_rows, LANES),
                             lambda c, i: (c * num_inner + i, 0))
    # one VMEM-resident (8,128) partial per split slice, revisited across i
    part_spec = pl.BlockSpec((8, LANES), lambda c, i: (c, 0))
    cparams = pltpu.CompilerParams(dimension_semantics=(lead_sem, "arbitrary"))

    # ---- pass 1: masked max of |diff| and exact valid count ----
    max_part, cnt_part = pl.pallas_call(
        _make_pass1_kernel(has_mask, rows, block_rows, num_inner, needs_tail_mask),
        grid=grid,
        in_specs=[tile_spec] * n_in,
        out_specs=(part_spec, part_spec),
        out_shape=(jax.ShapeDtypeStruct((split * 8, LANES), jnp.float32),
                   jax.ShapeDtypeStruct((split * 8, LANES), jnp.int32)),
        compiler_params=cparams,
    )(*operands)

    max_v = jnp.max(max_part)
    cnt = jnp.sum(cnt_part)  # int32, exact
    delta = (jnp.float32(threshold) * max_v).astype(jnp.float32).reshape(1, 1)

    # ---- pass 2: masked sum of berhu(diff; delta) ----
    sum_part = pl.pallas_call(
        _make_pass2_kernel(has_mask, rows, block_rows, num_inner, needs_tail_mask),
        grid=grid,
        in_specs=[pl.BlockSpec(memory_space=pltpu.SMEM)] + [tile_spec] * n_in,
        out_specs=part_spec,
        out_shape=jax.ShapeDtypeStruct((split * 8, LANES), jnp.float32),
        compiler_params=cparams,
    )(delta, *operands)

    total = jnp.sum(sum_part)
    return total / cnt.astype(jnp.float32)


def berhu_loss_ref(pred, target, mask=None, threshold=0.2):
    # pure-JAX reference mirroring the PyTorch forward
    valid = target > 0
    if mask is not None:
        valid = valid & (mask > 0)
    p = pred.astype(jnp.float32)
    t = target.astype(jnp.float32)
    diff = jnp.abs(t - p)
    delta = threshold * jnp.max(jnp.where(valid, diff, 0.0))
    part1 = jnp.where(diff < delta, diff, 0.0)
    sq = diff * diff + delta * delta
    part2 = jnp.where(sq > 2.0 * delta * delta, sq, 0.0) / (2.0 * delta)
    b = jnp.where(valid, part1 + part2, 0.0)
    return jnp.sum(b) / jnp.sum(valid.astype(jnp.float32))


if __name__ == "__main__":
    key = jax.random.PRNGKey(0)
    k1, k2, k3 = jax.random.split(key, 3)
    shape = (2, 4, 16, 16)  # NCHW, like the PyTorch module's inputs
    # target has a mix of positive (valid) and non-positive (invalid) entries
    target = jax.random.uniform(k1, shape, jnp.float32, minval=-0.5, maxval=2.0)
    pred = target + 0.3 * jax.random.normal(k2, shape, jnp.float32)

    # no-mask path (common case; no mask stream is materialized or read)
    loss = jax.block_until_ready(berhu_loss(pred, target, threshold=0.2))
    ref = jax.block_until_ready(berhu_loss_ref(pred, target, threshold=0.2))
    assert jnp.allclose(loss, ref, rtol=1e-5, atol=1e-6), (loss, ref)

    # masked path
    mask = (jax.random.uniform(k3, shape) > 0.3).astype(jnp.float32)
    loss_m = jax.block_until_ready(berhu_loss(pred, target, mask, threshold=0.2))
    ref_m = jax.block_until_ready(berhu_loss_ref(pred, target, mask, threshold=0.2))
    assert jnp.allclose(loss_m, ref_m, rtol=1e-5, atol=1e-6), (loss_m, ref_m)

    print("KERNEL_OK")
</pallas_src>

<mosaic_0001>
module attributes {stable_mosaic.version = 11 : i64} {
  func.func @kernel(%arg0: i32, %arg1: i32, %arg2: memref<16x128xf32, #tpu.memory_space<vmem>>, %arg3: memref<16x128xf32, #tpu.memory_space<vmem>>, %arg4: memref<8x128xf32, #tpu.memory_space<vmem>>, %arg5: memref<8x128xi32, #tpu.memory_space<vmem>>) attributes {dimension_semantics = [#tpu.dimension_semantics<arbitrary>, #tpu.dimension_semantics<arbitrary>], iteration_bounds = array<i64: 1, 1>, scalar_prefetch = 0 : i64, scratch_operands = 0 : i64, tpu.core_type = #tpu.core_type<tc>, window_params = [{transform_indices = @transform_0, window_bounds = array<i64: 16, 128>}, {transform_indices = @transform_1, window_bounds = array<i64: 16, 128>}, {transform_indices = @transform_2, window_bounds = array<i64: 8, 128>}, {transform_indices = @transform_3, window_bounds = array<i64: 8, 128>}]} {
    %c0 = arith.constant 0 : index
    %c0_0 = arith.constant 0 : index
    %0 = vector.load %arg3[%c0, %c0_0] : memref<16x128xf32, #tpu.memory_space<vmem>>, vector<16x128xf32>
    %c0_1 = arith.constant 0 : index
    %c0_2 = arith.constant 0 : index
    %1 = vector.load %arg2[%c0_1, %c0_2] : memref<16x128xf32, #tpu.memory_space<vmem>>, vector<16x128xf32>
    %cst = arith.constant 0.000000e+00 : f32
    %2 = vector.broadcast %cst : f32 to vector<16x128xf32>
    %3 = arith.cmpf ogt, %0, %2 : vector<16x128xf32>
    %4 = arith.subf %0, %1 : vector<16x128xf32>
    %5 = math.absf %4 : vector<16x128xf32>
    %cst_3 = arith.constant 0.000000e+00 : f32
    %6 = vector.broadcast %cst_3 : f32 to vector<16x128xf32>
    %7 = arith.select %3, %5, %6 : vector<16x128xi1>, vector<16x128xf32>
    %8 = vector.shape_cast %7 : vector<16x128xf32> to vector<2x8x128xf32>
    %cst_4 = arith.constant dense<0xFF800000> : vector<8x128xf32>
    %9 = vector.multi_reduction <maximumf>, %8, %cst_4 [0] : vector<2x8x128xf32> to vector<8x128xf32>
    %10 = arith.extui %3 : vector<16x128xi1> to vector<16x128xi32>
    %11 = vector.shape_cast %10 : vector<16x128xi32> to vector<2x8x128xi32>
    %cst_5 = arith.constant dense<0> : vector<8x128xi32>
    %12 = vector.multi_reduction <add>, %11, %cst_5 [0] : vector<2x8x128xi32> to vector<8x128xi32>
    %c0_i32 = arith.constant 0 : i32
    %13 = arith.cmpi eq, %arg1, %c0_i32 : i32
    %14 = arith.extui %13 : i1 to i32
    %c0_i32_6 = arith.constant 0 : i32
    %15 = arith.cmpi ne, %14, %c0_i32_6 : i32
    scf.if %15 {
      %c0_9 = arith.constant 0 : index
      %c0_10 = arith.constant 0 : index
      %19 = vector.load %arg4[%c0_9, %c0_10] : memref<8x128xf32, #tpu.memory_space<vmem>>, vector<8x128xf32>
      tpu.vector_store %arg4[%c0_9, %c0_10], %9 {strides = array<i32>} : memref<8x128xf32, #tpu.memory_space<vmem>>, vector<8x128xf32>,
      %c0_11 = arith.constant 0 : index
      %c0_12 = arith.constant 0 : index
      %20 = vector.load %arg5[%c0_11, %c0_12] : memref<8x128xi32, #tpu.memory_space<vmem>>, vector<8x128xi32>
      tpu.vector_store %arg5[%c0_11, %c0_12], %12 {strides = array<i32>} : memref<8x128xi32, #tpu.memory_space<vmem>>, vector<8x128xi32>,
    } else {
    }
    %c0_i32_7 = arith.constant 0 : i32
    %16 = arith.cmpi sgt, %arg1, %c0_i32_7 : i32
    %17 = arith.extui %16 : i1 to i32
    %c0_i32_8 = arith.constant 0 : i32
    %18 = arith.cmpi ne, %17, %c0_i32_8 : i32
    scf.if %18 {
      %c0_9 = arith.constant 0 : index
      %c0_10 = arith.constant 0 : index
      %19 = vector.load %arg4[%c0_9, %c0_10] : memref<8x128xf32, #tpu.memory_space<vmem>>, vector<8x128xf32>
      %20 = arith.maximumf %19, %9 : vector<8x128xf32>
      %c0_11 = arith.constant 0 : index
      %c0_12 = arith.constant 0 : index
      %21 = vector.load %arg4[%c0_11, %c0_12] : memref<8x128xf32, #tpu.memory_space<vmem>>, vector<8x128xf32>
      tpu.vector_store %arg4[%c0_11, %c0_12], %20 {strides = array<i32>} : memref<8x128xf32, #tpu.memory_space<vmem>>, vector<8x128xf32>,
      %c0_13 = arith.constant 0 : index
      %c0_14 = arith.constant 0 : index
      %22 = vector.load %arg5[%c0_13, %c0_14] : memref<8x128xi32, #tpu.memory_space<vmem>>, vector<8x128xi32>
      %23 = arith.addi %22, %12 : vector<8x128xi32>
      %c0_15 = arith.constant 0 : index
      %c0_16 = arith.constant 0 : index
      %24 = vector.load %arg5[%c0_15, %c0_16] : memref<8x128xi32, #tpu.memory_space<vmem>>, vector<8x128xi32>
      tpu.vector_store %arg5[%c0_15, %c0_16], %23 {strides = array<i32>} : memref<8x128xi32, #tpu.memory_space<vmem>>, vector<8x128xi32>,
    } else {
    }
    return
  }
  func.func @transform_0(%arg0: i32, %arg1: i32) -> (i32, i32) {
    %c1_i32 = arith.constant 1 : i32
    %0 = arith.muli %arg0, %c1_i32 : i32
    %1 = arith.addi %0, %arg1 : i32
    %c0_i32 = arith.constant 0 : i32
    %c0_i32_0 = arith.constant 0 : i32
    return %1, %c0_i32 : i32, i32
  }
  func.func @transform_1(%arg0: i32, %arg1: i32) -> (i32, i32) {
    %c1_i32 = arith.constant 1 : i32
    %0 = arith.muli %arg0, %c1_i32 : i32
    %1 = arith.addi %0, %arg1 : i32
    %c0_i32 = arith.constant 0 : i32
    %c0_i32_0 = arith.constant 0 : i32
    return %1, %c0_i32 : i32, i32
  }
  func.func @transform_2(%arg0: i32, %arg1: i32) -> (i32, i32) {
    %c0_i32 = arith.constant 0 : i32
    %c0_i32_0 = arith.constant 0 : i32
    return %arg0, %c0_i32 : i32, i32
  }
  func.func @transform_3(%arg0: i32, %arg1: i32) -> (i32, i32) {
    %c0_i32 = arith.constant 0 : i32
    %c0_i32_0 = arith.constant 0 : i32
    return %arg0, %c0_i32 : i32, i32
  }
}

</mosaic_0001>

<bundles_post_ra>
// kernel: tpu_custom_call.1
= control target key start
LH: loop header
LB: loop body
LE: loop exit
PB: predicated region body
PF: predicated region fallthrough
CT: control target
= control target key end

     0   :  { %9 = vsyncpa [#allocation3], 0  ;;  %s251_s0 = inlined_call_operand.hbm [shape: f32[16,128], index: 0, kind: input, shape index: {}]   ;;  %s252_s1 = inlined_call_operand.hbm [shape: f32[16,128], index: 1, kind: input, shape index: {}]   ;;  %s253_s2 = inlined_call_operand.hbm [shape: f32[8,128], index: 2, kind: output, shape index: {0}]   ;;  %s254_s3 = inlined_call_operand.hbm [shape: s32[8,128], index: 3, kind: output, shape index: {1}]  }
   0x1   :  { %10 = vsyncpa [#allocation6], 0 }
   0x2   :  { %11 = vsyncpa [#allocation4], 0 }
   0x3   :  { %12 = vsyncpa [#allocation9], 0  ;;  %s212_s12 = smov [#allocation2]  }
   0x4   :  { %s22_s13 = sshll.u32 %s212_s12, 4  ;;  %s23_s13 = int_to_ptr.vmem [resolvable:$true] %s22_s13 }
   0x5   :  { %s132_s14 = scalar_lea.vmem %s23_s13, 256  ;;  %p137_p1 = scmp.lt.s32.totalorder %s23_s13, %s23_s13 }
   0x6   :  { %p133_p0 = scmp.ne.s32.totalorder %s23_s13, %s132_s14  ;;  %p138_p2 = scmp.lt.s32.totalorder %s132_s14, %s132_s14 }
   0x8   :  { %p139_p3 = por %p138_p2, %p137_p1 }
   0xa   :  { %p140_p4 = pnand %p139_p3, %p133_p0 }
   0xc   :  { %143 = shalt.err (!%p140_p4)
}
   0xd   :  { %s213_s15 = smov 128   ;;  %s214_s16 = smov 8  }
   0xe   :  { %28 = dma.hbm_to_vmem [thread:$0]  %s251_s0, 256, %s23_s13, [#allocation3], %s213_s15, %s213_s15, %s214_s16  }
   0xf   :  { %s215_s19 = smov [#allocation5]  }
  0x10   :  { %s38_s20 = sshll.u32 %s215_s19, 4  ;;  %s39_s20 = int_to_ptr.vmem [resolvable:$true] %s38_s20 }
  0x11   :  { %s152_s21 = scalar_lea.vmem %s39_s20, 256  ;;  %p157_p6 = scmp.lt.s32.totalorder %s39_s20, %s39_s20 }
  0x12   :  { %p153_p5 = scmp.ne.s32.totalorder %s39_s20, %s152_s21  ;;  %p158_p7 = scmp.lt.s32.totalorder %s152_s21, %s152_s21 }
  0x14   :  { %p159_p8 = por %p158_p7, %p157_p6 }
  0x16   :  { %p160_p9 = pnand %p159_p8, %p153_p5 }
  0x18   :  { %163 = shalt.err (!%p160_p9)
}
  0x19   :  { %44 = dma.hbm_to_vmem [thread:$0]  %s252_s1, 256, %s39_s20, [#allocation6], %s213_s15, %s213_s15, %s214_s16  }
  0x1a   :  { %204 = dma.done.wait [#allocation3], 256  }
  0x1b   :  { %205 = vsyncadd [#allocation3], 4294967040 }
  0x1c   :  { %206 = dma.done.wait [#allocation6], 256  }
  0x1d   :  { %207 = vsyncadd [#allocation6], 4294967040  ;;  %v55_v0 = vld [vmem:[#allocation5] sm:$0xff]  ;;  %v56_v1 = vld [vmem:[#allocation5 + $0x8] sm:$0xff]  ;;  %s216_s0 = smov [#allocation8]   ;;  %v217_v6 = vmov 0  }
  0x1e   :  { %v57_v2 = vld [vmem:[#allocation2] sm:$0xff]  ;;  %s103_s24 = sshll.u32 %s216_s0, 4  ;;  %v58_v3 = vld [vmem:[#allocation2 + $0x8] sm:$0xff]  ;;  %vm59_vm0 = vcmp.gt.f32.partialorder %v55_v0, 0.0  ;;  %vm60_vm1 = vcmp.gt.f32.partialorder %v56_v1, 0.0  ;;  %s218_s1 = smov [#allocation7]   ;;  %s104_s24 = int_to_ptr.vmem [resolvable:$true] %s103_s24 }
  0x1f   :  { %v61_v4 = vsub.f32 %v55_v0, %v57_v2  ;;  %v62_v5 = vsub.f32 %v56_v1, %v58_v3  ;;  %v68_v7 = vsel %vm59_vm0, 1, %v217_v6  ;;  %v69_v8 = vsel %vm60_vm1, 1, %v217_v6  ;;  %s93_s25 = sshll.u32 %s218_s1, 4  ;;  %s164_s26 = scalar_lea.vmem %s104_s24, 128  ;;  %s94_s25 = int_to_ptr.vmem [resolvable:$true] %s93_s25 }
  0x20   :  { %v70_v10 = vadd.s32 %v69_v8, %v68_v7  ;;  %p165_p10 = scmp.ne.s32.totalorder %s104_s24, %s164_s26  ;;  %p169_p11 = scmp.lt.s32.totalorder %s104_s24, %s104_s24 }
  0x21   :  { %v63_v9 = vand.u32 2147483647, %v61_v4  ;;  %v64_v11 = vand.u32 2147483647, %v62_v5  ;;  %p170_p12 = scmp.lt.s32.totalorder %s164_s26, %s164_s26 }
  0x22   :  { %76 = vst [vmem:[#allocation8] sm:$0xff] %v70_v10 }
  0x23   :  { %v65_v12 = vsel %vm59_vm0, %v63_v9, 0.0  ;;  %v66_v13 = vsel %vm60_vm1, %v64_v11, 0.0  ;;  %p171_p13 = por %p170_p12, %p169_p11 }
  0x25   :  { %p172_p0 = pnand %p171_p13, %p165_p10 }
  0x27   :  { %175 = shalt.err (!%p172_p0)
}
  0x28   :  { %106 = dma.vmem_to_hbm [thread:$0]  %s104_s24, 128, %s254_s3, [#allocation9]   ;;  %v67_v14 = vmax.f32 %v65_v12, %v66_v13 }
  0x29   :  { %s184_s29 = scalar_lea.vmem %s94_s25, 128  ;;  %p189_p2 = scmp.lt.s32.totalorder %s94_s25, %s94_s25 }
  0x2a   :  { %75 = vst [vmem:[#allocation7] sm:$0xff] %v67_v14  ;;  %p185_p1 = scmp.ne.s32.totalorder %s94_s25, %s184_s29  ;;  %p190_p3 = scmp.lt.s32.totalorder %s184_s29, %s184_s29 }
  0x2c   :  { %p191_p4 = por %p190_p3, %p189_p2 }
  0x2e   :  { %p192_p5 = pnand %p191_p4, %p185_p1 }
  0x30   :  { %195 = shalt.err (!%p192_p5)
}
  0x31   :  { %96 = dma.vmem_to_hbm [thread:$0]  %s94_s25, 128, %s253_s2, [#allocation4]  }
  0x32   :  { %208 = dma.done.wait [#allocation4], 128  }
  0x33   :  { %209 = vsyncadd [#allocation4], 4294967168 }
  0x34   :  { %210 = dma.done.wait [#allocation9], 128  }
  0x35   :  { %211 = vsyncadd [#allocation9], 4294967168 }
  0x36   :  { %113 = vsyncpa [#allocation3], 1 }
  0x37   :  { %114 = vsyncpa [#allocation6], 1 }
  0x38   :  { %115 = vsyncpa [#allocation4], 1 }
  0x39   :  { %116 = vsyncpa [#allocation9], 1 }

</bundles_post_ra>
